<compile_context>
chip_gen: v6e
topology: v6e:2x2x1
jax: 0.10.0
libtpu: 0.0.40
codegen_flags: <defaults>
</compile_context>

<pallas_src>
import jax
import jax.numpy as jnp
from jax.experimental import pallas as pl
from jax.experimental.pallas import tpu as pltpu

EPS = 1e-5          # nn.BatchNorm1d default eps
_LANE = 128


def _round_up(x, m):
    return (x + m - 1) // m * m


def _make_kernel(n_true, tm, n_tiles):
    def kernel(zh_ref, w_ref, b_ref, g_ref, be_ref, l_ref, out_ref,
               z_theta_ref, z_conv_ref):
        i = pl.program_id(0)

        # ---- hoisted tiny matmul: Z_theta = Z_H @ W^T + b (done once) ------
        @pl.when(i == 0)
        def _():
            zt = jnp.dot(zh_ref[...], w_ref[...],
                         preferred_element_type=jnp.float32) + b_ref[...]
            z_theta_ref[...] = zt.astype(z_theta_ref.dtype)

        # ---- streamed row tile of the big matmul: L_tile @ Z_theta ---------
        row0 = pl.multiple_of(i * tm, tm)
        z_conv_ref[pl.ds(row0, tm), :] = jnp.dot(
            l_ref[...], z_theta_ref[...], preferred_element_type=jnp.float32)

        # ---- epilogue: BatchNorm1d (batch stats over ALL N rows) + ReLU + max
        @pl.when(i == n_tiles - 1)
        def _():
            zc = z_conv_ref[...]                               # (n_pad, Cout) f32
            rows = jax.lax.broadcasted_iota(jnp.int32, (zc.shape[0], 1), 0)
            valid = rows < n_true                              # mask padded rows
            inv_n = 1.0 / n_true
            mean = jnp.sum(zc, axis=0, keepdims=True) * inv_n  # pads are exact 0
            centered = jnp.where(valid, zc - mean, 0.0)
            var = jnp.sum(centered * centered, axis=0, keepdims=True) * inv_n
            inv_std = jax.lax.rsqrt(var + EPS)
            z_bn = centered * inv_std * g_ref[...] + be_ref[...]
            z_psi = jnp.maximum(z_bn, 0.0)
            out_ref[...] = jnp.max(z_psi, axis=1, keepdims=True)

    return kernel


def higher_order_simplicial_conv(Z_H, L1_tilde, W, b, gamma, beta, *,
                                 l_dtype=jnp.float32, tm=None,
                                 l_tile_budget_bytes=24 << 20):
    """Z_H: (N, Cin), L1_tilde: (N, N) dense, W: (Cout, Cin) (torch layout),
    b/gamma/beta: (Cout,).  Returns (N, 1) float32."""
    N, Cin = Z_H.shape
    Cout = W.shape[0]
    itemsize = jnp.dtype(l_dtype).itemsize

    # ---- pick the row-tile size so 2 x (TM, N) L buffers fit the budget ----
    n_est = _round_up(N, 8)
    if tm is None:
        tm = l_tile_budget_bytes // (2 * _round_up(n_est, _LANE) * itemsize)
        tm = int(tm) // 8 * 8
    tm = max(8, min(_round_up(int(tm), 8), 1024, n_est))
    n_pad = pl.cdiv(N, tm) * tm
    n_tiles = n_pad // tm

    # ---- pad to the tiled extent (zero padding keeps the math exact) -------
    Z_Hp = jnp.pad(Z_H.astype(jnp.float32), ((0, n_pad - N), (0, 0)))
    Lp = jnp.pad(L1_tilde.astype(jnp.float32),
                 ((0, n_pad - N), (0, n_pad - N))).astype(l_dtype)
    W_t = W.T.astype(jnp.float32)                  # (Cin, Cout): x @ W^T
    b2 = b.reshape(1, Cout).astype(jnp.float32)
    g2 = gamma.reshape(1, Cout).astype(jnp.float32)
    be2 = beta.reshape(1, Cout).astype(jnp.float32)

    # ---- explicit VMEM budget: L double-buffer + scratches + resident arrays
    cout_l = _round_up(Cout, _LANE)
    cin_l = _round_up(Cin, _LANE)
    lane_n = _round_up(n_pad, _LANE)
    vmem_needed = (2 * tm * lane_n * itemsize            # L tile, double-buffered
                   + n_pad * cout_l * (itemsize + 4)     # Z_theta + Z_conv scratch
                   + 2 * n_pad * cin_l * 4               # Z_H (resident)
                   + 2 * n_pad * _LANE * 4               # (N, 1) output
                   + 16 * cout_l * 4)                    # W_t / b / gamma / beta
    vmem_limit = int(min(max(int(vmem_needed * 1.5), 32 << 20), 64 << 20))

    kernel = _make_kernel(N, tm, n_tiles)
    out = pl.pallas_call(
        kernel,
        out_shape=jax.ShapeDtypeStruct((n_pad, 1), jnp.float32),
        grid=(n_tiles,),
        in_specs=[
            pl.BlockSpec((n_pad, Cin), lambda i: (0, 0)),    # Z_H (resident)
            pl.BlockSpec((Cin, Cout), lambda i: (0, 0)),     # W^T
            pl.BlockSpec((1, Cout), lambda i: (0, 0)),       # b
            pl.BlockSpec((1, Cout), lambda i: (0, 0)),       # gamma
            pl.BlockSpec((1, Cout), lambda i: (0, 0)),       # beta
            pl.BlockSpec((tm, n_pad), lambda i: (i, 0)),     # L row tile (streamed)
        ],
        out_specs=pl.BlockSpec((n_pad, 1), lambda i: (0, 0)),  # resident, written once
        scratch_shapes=[
            pltpu.VMEM((n_pad, Cout), l_dtype),      # Z_theta (persistent)
            pltpu.VMEM((n_pad, Cout), jnp.float32),  # cached Z_conv for BN pass 2
        ],
        compiler_params=pltpu.CompilerParams(
            # Row axis must stay 'arbitrary': Z_conv cache + BN stats are global.
            # TODO(synk): a v7x 2-TC split would need per-core partial BN stats.
            dimension_semantics=("arbitrary",),
            vmem_limit_bytes=vmem_limit,
        ),
    )(Z_Hp, W_t, b2, g2, be2, Lp)
    return out[:N, :]


def reference(Z_H, L1_tilde, W, b, gamma, beta):
    z_theta = Z_H @ W.T + b
    z_conv = L1_tilde @ z_theta
    mean = z_conv.mean(axis=0, keepdims=True)
    var = ((z_conv - mean) ** 2).mean(axis=0, keepdims=True)
    z_bn = (z_conv - mean) / jnp.sqrt(var + EPS) * gamma + beta
    z_psi = jnp.maximum(z_bn, 0.0)
    return jnp.max(z_psi, axis=1, keepdims=True)


if __name__ == "__main__":
    key = jax.random.PRNGKey(0)
    k1, k2, k3, k4, k5, k6 = jax.random.split(key, 6)

    # --- small shapes implied by the module (N nodes, Cin -> Cout channels) -
    N, Cin, Cout = 16, 8, 32
    Z_H = jax.random.normal(k1, (N, Cin), dtype=jnp.float32)
    L1_tilde = jax.random.normal(k2, (N, N), dtype=jnp.float32)
    W = jax.random.normal(k3, (Cout, Cin), dtype=jnp.float32) / jnp.sqrt(Cin)
    b = jax.random.normal(k4, (Cout,), dtype=jnp.float32) * 0.1
    gamma = jnp.ones((Cout,), dtype=jnp.float32)   # BatchNorm1d default weight
    beta = jnp.zeros((Cout,), dtype=jnp.float32)   # BatchNorm1d default bias

    out = higher_order_simplicial_conv(Z_H, L1_tilde, W, b, gamma, beta)
    jax.block_until_ready(out)
    ref = reference(Z_H, L1_tilde, W, b, gamma, beta)
    assert out.shape == (N, 1)
    assert jnp.allclose(out, ref, atol=1e-4, rtol=1e-4)

    # --- multi-tile + ragged-N path: exercises the grid, padding, and the
    #     global-N BatchNorm reduction ---------------------------------------
    N2 = 300
    Z_H2 = jax.random.normal(k5, (N2, Cin), dtype=jnp.float32)
    L2 = jax.random.normal(k6, (N2, N2), dtype=jnp.float32) / jnp.sqrt(N2)
    out2 = higher_order_simplicial_conv(Z_H2, L2, W, b, gamma, beta, tm=64)
    jax.block_until_ready(out2)
    ref2 = reference(Z_H2, L2, W, b, gamma, beta)
    assert out2.shape == (N2, 1)
    assert jnp.allclose(out2, ref2, atol=1e-3, rtol=1e-3)

    # --- bandwidth path: stream L in bf16, accumulate in f32 ----------------
    out3 = higher_order_simplicial_conv(Z_H2, L2, W, b, gamma, beta,
                                        tm=64, l_dtype=jnp.bfloat16)
    jax.block_until_ready(out3)
    assert out3.shape == (N2, 1)
    assert jnp.allclose(out3, ref2, atol=1e-1, rtol=1e-1)

    print("KERNEL_OK")
</pallas_src>

<mosaic_0001>
module attributes {stable_mosaic.version = 11 : i64} {
  func.func @kernel(%arg0: i32, %arg1: memref<16x8xf32, #tpu.memory_space<vmem>>, %arg2: memref<8x32xf32, #tpu.memory_space<vmem>>, %arg3: memref<1x32xf32, #tpu.memory_space<vmem>>, %arg4: memref<1x32xf32, #tpu.memory_space<vmem>>, %arg5: memref<1x32xf32, #tpu.memory_space<vmem>>, %arg6: memref<16x16xf32, #tpu.memory_space<vmem>>, %arg7: memref<16x1xf32, #tpu.memory_space<vmem>>, %arg8: memref<16x32xf32, #tpu.memory_space<vmem>>, %arg9: memref<16x32xf32, #tpu.memory_space<vmem>>) attributes {dimension_semantics = [#tpu.dimension_semantics<arbitrary>], iteration_bounds = array<i64: 1>, scalar_prefetch = 0 : i64, scratch_operands = 2 : i64, tpu.core_type = #tpu.core_type<tc>, window_params = [{pipeline_mode = #tpu.pipeline_mode<synchronous>, transform_indices = @transform_0, window_bounds = array<i64: 16, 8>}, {pipeline_mode = #tpu.pipeline_mode<synchronous>, transform_indices = @transform_1, window_bounds = array<i64: 8, 32>}, {pipeline_mode = #tpu.pipeline_mode<synchronous>, transform_indices = @transform_2, window_bounds = array<i64: 1, 32>}, {pipeline_mode = #tpu.pipeline_mode<synchronous>, transform_indices = @transform_3, window_bounds = array<i64: 1, 32>}, {pipeline_mode = #tpu.pipeline_mode<synchronous>, transform_indices = @transform_4, window_bounds = array<i64: 1, 32>}, {transform_indices = @transform_5, window_bounds = array<i64: 16, 16>}, {pipeline_mode = #tpu.pipeline_mode<synchronous>, transform_indices = @transform_6, window_bounds = array<i64: 16, 1>}]} {
    %c0_i32 = arith.constant 0 : i32
    %0 = arith.cmpi eq, %arg0, %c0_i32 : i32
    %1 = arith.extui %0 : i1 to i32
    %c0_i32_0 = arith.constant 0 : i32
    %2 = arith.cmpi ne, %1, %c0_i32_0 : i32
    scf.if %2 {
      %c0_7 = arith.constant 0 : index
      %c0_8 = arith.constant 0 : index
      %13 = vector.load %arg1[%c0_7, %c0_8] : memref<16x8xf32, #tpu.memory_space<vmem>>, vector<16x8xf32>
      %c0_9 = arith.constant 0 : index
      %c0_10 = arith.constant 0 : index
      %14 = vector.load %arg2[%c0_9, %c0_10] : memref<8x32xf32, #tpu.memory_space<vmem>>, vector<8x32xf32>
      %cst_11 = arith.constant dense<0.000000e+00> : vector<16x32xf32>
      %15 = tpu.matmul %13, %14, %cst_11 {dimension_numbers = #tpu.dot_dimension_numbers<[1], [0], [0], [1], [0, 0, 1, 1], [], []>} : vector<16x8xf32>, vector<8x32xf32>, vector<16x32xf32> -> vector<16x32xf32>
      %c0_12 = arith.constant 0 : index
      %c0_13 = arith.constant 0 : index
      %16 = vector.load %arg3[%c0_12, %c0_13] : memref<1x32xf32, #tpu.memory_space<vmem>>, vector<1x32xf32>
      %17 = vector.broadcast %16 : vector<1x32xf32> to vector<16x32xf32>
      %18 = arith.addf %15, %17 : vector<16x32xf32>
      %c0_14 = arith.constant 0 : index
      %c0_15 = arith.constant 0 : index
      %19 = vector.load %arg8[%c0_14, %c0_15] : memref<16x32xf32, #tpu.memory_space<vmem>>, vector<16x32xf32>
      tpu.vector_store %arg8[%c0_14, %c0_15], %18 {strides = array<i32>} : memref<16x32xf32, #tpu.memory_space<vmem>>, vector<16x32xf32>,
    } else {
    }
    %c16_i32 = arith.constant 16 : i32
    %3 = arith.muli %arg0, %c16_i32 : i32
    %4 = tpu.assume_multiple %3, 16 : i32
    %c0 = arith.constant 0 : index
    %c0_1 = arith.constant 0 : index
    %5 = vector.load %arg6[%c0, %c0_1] : memref<16x16xf32, #tpu.memory_space<vmem>>, vector<16x16xf32>
    %c0_2 = arith.constant 0 : index
    %c0_3 = arith.constant 0 : index
    %6 = vector.load %arg8[%c0_2, %c0_3] : memref<16x32xf32, #tpu.memory_space<vmem>>, vector<16x32xf32>
    %cst = arith.constant dense<0.000000e+00> : vector<16x32xf32>
    %7 = tpu.matmul %5, %6, %cst {dimension_numbers = #tpu.dot_dimension_numbers<[1], [0], [0], [1], [0, 0, 1, 1], [], []>} : vector<16x16xf32>, vector<16x32xf32>, vector<16x32xf32> -> vector<16x32xf32>
    %8 = arith.index_cast %4 : i32 to index
    %c0_4 = arith.constant 0 : index
    %9 = vector.load %arg9[%8, %c0_4] : memref<16x32xf32, #tpu.memory_space<vmem>>, vector<16x32xf32>
    tpu.vector_store %arg9[%8, %c0_4], %7 {strides = array<i32>} : memref<16x32xf32, #tpu.memory_space<vmem>>, vector<16x32xf32>,
    %c0_i32_5 = arith.constant 0 : i32
    %10 = arith.cmpi eq, %arg0, %c0_i32_5 : i32
    %11 = arith.extui %10 : i1 to i32
    %c0_i32_6 = arith.constant 0 : i32
    %12 = arith.cmpi ne, %11, %c0_i32_6 : i32
    scf.if %12 {
      %c0_7 = arith.constant 0 : index
      %c0_8 = arith.constant 0 : index
      %13 = vector.load %arg9[%c0_7, %c0_8] : memref<16x32xf32, #tpu.memory_space<vmem>>, vector<16x32xf32>
      %14 = tpu.iota {dimensions = array<i32: 0>} : vector<16x1xi32>
      %c16_i32_9 = arith.constant 16 : i32
      %15 = vector.broadcast %c16_i32_9 : i32 to vector<16x1xi32>
      %16 = arith.cmpi slt, %14, %15 : vector<16x1xi32>
      %cst_10 = arith.constant dense<0.000000e+00> : vector<32xf32>
      %17 = vector.multi_reduction <add>, %13, %cst_10 [0] : vector<16x32xf32> to vector<32xf32>
      %18 = vector.shape_cast %17 : vector<32xf32> to vector<1x32xf32>
      %cst_11 = arith.constant 6.250000e-02 : f32
      %19 = vector.broadcast %cst_11 : f32 to vector<1x32xf32>
      %20 = arith.mulf %18, %19 : vector<1x32xf32>
      %21 = vector.broadcast %20 : vector<1x32xf32> to vector<16x32xf32>
      %22 = arith.subf %13, %21 : vector<16x32xf32>
      %cst_12 = arith.constant 0.000000e+00 : f32
      %23 = vector.shape_cast %16 : vector<16x1xi1> to vector<16x1xi1>
      %24 = vector.broadcast %23 : vector<16x1xi1> to vector<16x32xi1>
      %25 = vector.broadcast %cst_12 : f32 to vector<16x32xf32>
      %26 = arith.select %24, %22, %25 : vector<16x32xi1>, vector<16x32xf32>
      %27 = arith.mulf %26, %26 : vector<16x32xf32>
      %cst_13 = arith.constant dense<0.000000e+00> : vector<32xf32>
      %28 = vector.multi_reduction <add>, %27, %cst_13 [0] : vector<16x32xf32> to vector<32xf32>
      %29 = vector.shape_cast %28 : vector<32xf32> to vector<1x32xf32>
      %cst_14 = arith.constant 6.250000e-02 : f32
      %30 = vector.broadcast %cst_14 : f32 to vector<1x32xf32>
      %31 = arith.mulf %29, %30 : vector<1x32xf32>
      %cst_15 = arith.constant 9.99999974E-6 : f32
      %32 = vector.broadcast %cst_15 : f32 to vector<1x32xf32>
      %33 = arith.addf %31, %32 : vector<1x32xf32>
      %34 = math.rsqrt %33 : vector<1x32xf32>
      %35 = vector.broadcast %34 : vector<1x32xf32> to vector<16x32xf32>
      %36 = arith.mulf %26, %35 : vector<16x32xf32>
      %c0_16 = arith.constant 0 : index
      %c0_17 = arith.constant 0 : index
      %37 = vector.load %arg4[%c0_16, %c0_17] : memref<1x32xf32, #tpu.memory_space<vmem>>, vector<1x32xf32>
      %38 = vector.broadcast %37 : vector<1x32xf32> to vector<16x32xf32>
      %39 = arith.mulf %36, %38 : vector<16x32xf32>
      %c0_18 = arith.constant 0 : index
      %c0_19 = arith.constant 0 : index
      %40 = vector.load %arg5[%c0_18, %c0_19] : memref<1x32xf32, #tpu.memory_space<vmem>>, vector<1x32xf32>
      %41 = vector.broadcast %40 : vector<1x32xf32> to vector<16x32xf32>
      %42 = arith.addf %39, %41 : vector<16x32xf32>
      %cst_20 = arith.constant 0.000000e+00 : f32
      %43 = vector.broadcast %cst_20 : f32 to vector<16x32xf32>
      %44 = arith.maximumf %42, %43 : vector<16x32xf32>
      %cst_21 = arith.constant dense<0xFF800000> : vector<16xf32>
      %45 = vector.multi_reduction <maximumf>, %44, %cst_21 [1] : vector<16x32xf32> to vector<16xf32>
      %46 = vector.shape_cast %45 : vector<16xf32> to vector<16x1xf32>
      %c0_22 = arith.constant 0 : index
      %c0_23 = arith.constant 0 : index
      %47 = vector.load %arg7[%c0_22, %c0_23] : memref<16x1xf32, #tpu.memory_space<vmem>>, vector<16x1xf32>
      tpu.vector_store %arg7[%c0_22, %c0_23], %46 {strides = array<i32>} : memref<16x1xf32, #tpu.memory_space<vmem>>, vector<16x1xf32>,
    } else {
    }
    return
  }
  func.func @transform_0(%arg0: i32) -> (i32, i32) {
    %c0_i32 = arith.constant 0 : i32
    %c0_i32_0 = arith.constant 0 : i32
    %c0_i32_1 = arith.constant 0 : i32
    return %c0_i32, %c0_i32_0 : i32, i32
  }
  func.func @transform_1(%arg0: i32) -> (i32, i32) {
    %c0_i32 = arith.constant 0 : i32
    %c0_i32_0 = arith.constant 0 : i32
    %c0_i32_1 = arith.constant 0 : i32
    return %c0_i32, %c0_i32_0 : i32, i32
  }
  func.func @transform_2(%arg0: i32) -> (i32, i32) {
    %c0_i32 = arith.constant 0 : i32
    %c0_i32_0 = arith.constant 0 : i32
    %c0_i32_1 = arith.constant 0 : i32
    return %c0_i32, %c0_i32_0 : i32, i32
  }
  func.func @transform_3(%arg0: i32) -> (i32, i32) {
    %c0_i32 = arith.constant 0 : i32
    %c0_i32_0 = arith.constant 0 : i32
    %c0_i32_1 = arith.constant 0 : i32
    return %c0_i32, %c0_i32_0 : i32, i32
  }
  func.func @transform_4(%arg0: i32) -> (i32, i32) {
    %c0_i32 = arith.constant 0 : i32
    %c0_i32_0 = arith.constant 0 : i32
    %c0_i32_1 = arith.constant 0 : i32
    return %c0_i32, %c0_i32_0 : i32, i32
  }
  func.func @transform_5(%arg0: i32) -> (i32, i32) {
    %c0_i32 = arith.constant 0 : i32
    %c0_i32_0 = arith.constant 0 : i32
    return %arg0, %c0_i32 : i32, i32
  }
  func.func @transform_6(%arg0: i32) -> (i32, i32) {
    %c0_i32 = arith.constant 0 : i32
    %c0_i32_0 = arith.constant 0 : i32
    %c0_i32_1 = arith.constant 0 : i32
    return %c0_i32, %c0_i32_0 : i32, i32
  }
}

</mosaic_0001>

<bundles_post_ra>
// kernel: tpu_custom_call.1
= control target key start
LH: loop header
LB: loop body
LE: loop exit
PB: predicated region body
PF: predicated region fallthrough
CT: control target
= control target key end

     0   :  { %vm37_vm0 = vcmask 64512   ;;  %vm127_vm1 = vcmask 130048   ;;  %vm119_vm2 = vcmask 261120   ;;  %vm283_vm3 = vcmask 7168   ;;  %s395_s1 = inlined_call_operand.vmem [shape: f32[8,32], index: 1, kind: input, shape index: {}]   ;;  %s396_s0 = inlined_call_operand.vmem [shape: f32[16,8], index: 0, kind: input, shape index: {}]   ;;  %s397_s5 = inlined_call_operand.vmem [shape: f32[16,16], index: 5, kind: input, shape index: {}]   ;;  %s398_s2 = inlined_call_operand.vmem [shape: f32[1,32], index: 2, kind: input, shape index: {}]   ;;  %s399_s3 = inlined_call_operand.vmem [shape: f32[1,32], index: 3, kind: input, shape index: {}]   ;;  %s400_s4 = inlined_call_operand.vmem [shape: f32[1,32], index: 4, kind: input, shape index: {}]   ;;  %s401_s6 = inlined_call_operand.vmem [shape: f32[16,1], index: 6, kind: output, shape index: {}]  }
   0x1   :  { %v29_v0 = vld [vmem:[%s395_s1] sm:$0xff]  ;;  %v28_v2 = vld [vmem:[%s396_s0 + $0x8] sm:$0xff] }
   0x2   :  { %v27_v1 = vld [vmem:[%s396_s0] sm:$0xff]  ;;  %304 = vmatprep.subr.mxu0 %v29_v0  ;;  %v124_v11 = vld [vmem:[%s397_s5 + $0x8] sm:$0xff] }
   0x3   :  { %306 = vmatprep.mubr.msk.f32.mxu0 %vm37_vm0, %v27_v1  ;;  %305 = vmatpush3.msra.mxu0 %v29_v0  ;;  %v123_v3 = vld [vmem:[%s397_s5] sm:$0xff] }
   0x4   :  { %307 = vmatmul.mubr.msk.f32.vlgmr.msra.gmra.mxu0 %vm37_vm0, %v28_v2  ;;  %313 = vmatprep.mubr.msk.f32.mxu1 %vm127_vm1, %v123_v3  ;;  %v290_v4 = vld [vmem:[%s398_s2] ss:$0 sm:$0xff] }
   0x5   :  { %v295_v42 = vld [vmem:[%s399_s3] ss:$0 sm:$0xff] }
   0x6   :  { %v296_v45 = vld [vmem:[%s400_s4] ss:$0 sm:$0xff] }
  0xc4   :  { %v308_v5 = vpop.f32.mrf.mxu0 }
  0xc5   :  { %v116_v6 = vadd.f32 %v308_v5, %v290_v4 }
  0xc6   :  { %v110_v7 = vpop.f32.mrf.mxu0 }
  0xc7   :  { %121 = vst.msk [vmem:[#allocation2 + $0x8] sm:$0xff] %vm119_vm2, %v116_v6  ;;  %v111_v8 = vadd.f32 %v290_v4, %v110_v7 }
  0xc9   :  { %120 = vst.msk [vmem:[#allocation2] sm:$0xff] %vm119_vm2, %v111_v8 }
  0xce   :  { %v126_v9 = vld [vmem:[#allocation2 + $0x8] sm:$0xff] }
  0xcf   :  { %309 = vmatprep.subr.mxu1 %v126_v9 }
  0xd0   :  { %310 = vmatpush3.msra.mxu1 %v126_v9  ;;  %v125_v10 = vld [vmem:[#allocation2] sm:$0xff] }
  0xd1   :  { %311 = vmatprep.subr.mxu1 %v125_v10 }
  0xd2   :  { %312 = vmatpush3.msra.mxu1 %v125_v10 }
  0xd3   :  { %314 = vmatmul.mubr.msk.f32.vlgmr.msra.gmra.mxu1 %vm127_vm1, %v124_v11 }
 0x193   :  { %v315_v12 = vpop.f32.mrf.mxu1 }
 0x194   :  { %212 = vst.msk [vmem:[#allocation3 + $0x8] sm:$0xff] %vm119_vm2, %v315_v12 }
 0x195   :  { %v200_v13 = vpop.f32.mrf.mxu1 }
 0x196   :  { %211 = vst.msk [vmem:[#allocation3] sm:$0xff] %vm119_vm2, %v200_v13 }
 0x19b   :  { %v217_v14 = vld [vmem:[#allocation3 + $0x8] sm:$0xff] }
 0x19c   :  { %v224_v17 = vsel %vm119_vm2, %v217_v14, 0.0 }
 0x19d   :  { %v216_v15 = vld [vmem:[#allocation3] sm:$0xff] }
 0x19e   :  { %v223_v16 = vsel %vm119_vm2, %v216_v15, 0.0 }
 0x19f   :  { %v225_v18 = vadd.f32 %v224_v17, %v223_v16 }
 0x1a1   :  { %v226_v19 = vrot.slane %v225_v18, 4 }
 0x1a3   :  { %v227_v20 = vadd.f32 %v226_v19, %v225_v18 }
 0x1a5   :  { %v228_v21 = vrot.slane %v227_v20, 2 }
 0x1a7   :  { %v229_v22 = vadd.f32 %v228_v21, %v227_v20 }
 0x1a9   :  { %v230_v23 = vrot.slane %v229_v22, 1 }
 0x1ab   :  { %v231_v24 = vadd.f32 %v230_v23, %v229_v22 }
 0x1ad   :  { %v232_v25 = vmul.f32 0.0625, %v231_v24 }
 0x1af   :  { %v233_v26 = vsub.f32 %v216_v15, %v232_v25  ;;  %v234_v27 = vsub.f32 %v217_v14, %v232_v25 }
 0x1b1   :  { %v241_v28 = vmul.f32 %v233_v26, %v233_v26  ;;  %v242_v29 = vmul.f32 %v234_v27, %v234_v27 }
 0x1b3   :  { %v243_v30 = vsel %vm119_vm2, %v241_v28, 0.0  ;;  %v244_v31 = vsel %vm119_vm2, %v242_v29, 0.0 }
 0x1b4   :  { %v245_v32 = vadd.f32 %v244_v31, %v243_v30 }
 0x1b6   :  { %v246_v33 = vrot.slane %v245_v32, 4 }
 0x1b8   :  { %v247_v34 = vadd.f32 %v246_v33, %v245_v32 }
 0x1ba   :  { %v248_v35 = vrot.slane %v247_v34, 2 }
 0x1bc   :  { %v249_v36 = vadd.f32 %v248_v35, %v247_v34 }
 0x1be   :  { %v250_v37 = vrot.slane %v249_v36, 1 }
 0x1c0   :  { %v251_v38 = vadd.f32 %v250_v37, %v249_v36 }
 0x1c2   :  { %v252_v39 = vmul.f32 0.0625, %v251_v38 }
 0x1c4   :  { %v253_v40 = vadd.f32 1e-05, %v252_v39 }
 0x1c6   :  { %316 = vrsqrt.f32 %v253_v40 }
 0x1d3   :  { %v317_v41 = vpop.eup %316 }
 0x1d4   :  { %v255_v43 = vmul.f32 %v317_v41, %v233_v26  ;;  %v256_v44 = vmul.f32 %v317_v41, %v234_v27 }
 0x1d6   :  { %v264_v46 = vmul.f32 %v295_v42, %v255_v43  ;;  %v265_v47 = vmul.f32 %v295_v42, %v256_v44 }
 0x1d8   :  { %v273_v48 = vadd.f32 %v296_v45, %v264_v46  ;;  %v274_v49 = vadd.f32 %v296_v45, %v265_v47 }
 0x1da   :  { %v275_v50 = vmax.f32 %v273_v48, 0.0  ;;  %v276_v52 = vmax.f32 %v274_v49, 0.0 }
 0x1dc   :  { %v277_v51 = vsel %vm119_vm2, %v275_v50, -inf  ;;  %v280_v53 = vsel %vm119_vm2, %v276_v52, -inf }
 0x1dd   :  { %278 = vmax.xlane.f32.xlu0 %v277_v51 }
 0x1e1   :  { %281 = vmax.xlane.f32.xlu0 %v280_v53 }
 0x266   :  { %v279_v54 = vpop.xlane.xlu0 %278 }
 0x267   :  { %284 = vst.msk [vmem:[%s401_s6] sm:$0xff] %vm283_vm3, %v279_v54 }
 0x26a   :  { %v282_v55 = vpop.xlane.xlu0 %281 }
 0x26b   :  { %285 = vst.msk [vmem:[%s401_s6 + $0x8] sm:$0xff] %vm283_vm3, %v282_v55 }

</bundles_post_ra>
